<compile_context>
chip_gen: v7x
topology: tpu7x:2x2x1
jax: 0.10.0
libtpu: 0.0.40
codegen_flags: <defaults>
</compile_context>

<pallas_src>
import jax
import jax.numpy as jnp
import numpy as np
from jax.experimental import pallas as pl
from jax.experimental.pallas import tpu as pltpu

SMOOTH = 1e-5
LAMBDA_DICE = 1.0
LAMBDA_CE = 1.0


def _dice_ce_kernel(x_ref, t_ref, out_ref):
    s = pl.program_id(2)

    C, TS, _ = x_ref.shape
    n_fold = TS // 8

    @pl.when(s == 0)
    def _():
        out_ref[...] = jnp.zeros_like(out_ref)

    def fold(a):
        # (TS, 128) -> (8, 128): tile-aligned regroup + VPU adds (no XLU).
        return jnp.sum(a.reshape(n_fold, 8, 128), axis=0)

    # ---- class max in native dtype (no up-front f32 copy of the block) ----
    # TODO(synk): for C >~ 32, switch these unrolled class loops to
    # lax.fori_loop(unroll=8) to bound code size / compile time.
    m = x_ref[0]
    for c in range(1, C):
        m = jnp.maximum(m, x_ref[c])
    m = m.astype(jnp.float32)                   # (TS, 128)

    # ---- e_c = exp(x_c - m): f32 cast fused into the subtract/exp; no xm ----
    e = []
    z = None
    for c in range(C):
        ec = jnp.exp(x_ref[c].astype(jnp.float32) - m)
        e.append(ec)
        z = ec if z is None else z + ec         # (TS, 128)

    zinv = pl.reciprocal(z, approx=True)        # EUP slot (nearly free)
    zinv = zinv * (2.0 - z * zinv)              # one Newton step -> ~f32-exact
    logz = jnp.log(z)

    tgt = t_ref[...].astype(jnp.int32)          # widen int8 targets once
    valid = (tgt >= 0).astype(jnp.float32)      # -1 marks padding

    # ---- per-class dice partials + CE target-logit gather on raw logits ----
    ce_tgt_x = jnp.zeros_like(z)
    for c in range(C):
        onehot = (tgt == c).astype(jnp.float32)              # padding -> 0
        p_c = e[c] * zinv
        out_ref[c] = out_ref[c] + fold(p_c * onehot)                 # intersection
        out_ref[C + c] = out_ref[C + c] + fold(p_c * p_c * valid)    # sum p^2
        out_ref[2 * C + c] = out_ref[2 * C + c] + fold(onehot)       # sum t (==t^2)
        ce_tgt_x = ce_tgt_x + onehot * x_ref[c].astype(jnp.float32)

    # CE per voxel: -log p_t = logz + m - x_t ; padded voxels contribute 0.
    out_ref[3 * C] = out_ref[3 * C] + fold(valid * (logz + m) - ce_tgt_x)


def dice_ce_loss(logits, targets, *, tile_rows=None, num_spatial_splits=2):
    """logits: (B, C, D, H, W) float (any float dtype); targets: (B, 1, D, H, W) int."""
    B, C = int(logits.shape[0]), int(logits.shape[1])
    S = 1
    for d in logits.shape[2:]:
        S *= int(d)

    x = jnp.reshape(logits, (B, C, S))                       # keep native dtype
    tgt_dtype = jnp.int8 if C <= 127 else jnp.int32          # int8 cuts target HBM 4x
    t = jnp.reshape(targets, (B, S)).astype(tgt_dtype)

    itemsize = int(jnp.dtype(logits.dtype).itemsize)
    t_itemsize = int(jnp.dtype(tgt_dtype).itemsize)

    ROW_ALIGN = 32                          # covers f32 (8), bf16 (16), int8 (32) tiling
    rows = -(-S // 128)
    rows_aligned = -(-rows // ROW_ALIGN) * ROW_ALIGN

    # ---- generation-aware sizing (v7x: 64 MiB VMEM; v5e/v6e: 128 MiB) ----
    try:
        info = pltpu.get_tpu_info()
        vmem_bytes = int(getattr(info, "vmem_capacity_bytes", 128 * 1024 * 1024))
    except Exception:
        vmem_bytes = 128 * 1024 * 1024
    if vmem_bytes >= 128 * 1024 * 1024:
        target_block_bytes = 6 * 1024 * 1024     # larger tiles amortize per-step cost
        max_tile_rows = 8192
    else:
        target_block_bytes = 2 * 1024 * 1024     # bounded live temporaries on 64 MiB
        max_tile_rows = 2048
    vmem_limit = int(min(96 * 1024 * 1024, vmem_bytes * 0.6))

    if tile_rows is None:
        tile_rows = target_block_bytes // (C * 128 * itemsize)
        tile_rows = max(ROW_ALIGN, min(max_tile_rows, tile_rows))
    tile_rows = max(ROW_ALIGN, (int(tile_rows) // ROW_ALIGN) * ROW_ALIGN)
    tile_rows = min(tile_rows, rows_aligned)

    n_tiles = -(-rows_aligned // tile_rows)
    ns = max(1, min(int(num_spatial_splits), n_tiles))       # dual-TC grain on v7x
    n_tiles = -(-n_tiles // ns) * ns
    tiles_per_split = n_tiles // ns
    rows_padded = n_tiles * tile_rows
    S_pad = rows_padded * 128

    x = jnp.pad(x, ((0, 0), (0, 0), (0, S_pad - S)))                 # zeros: safe softmax
    t = jnp.pad(t, ((0, 0), (0, S_pad - S)), constant_values=-1)     # -1 marks padding
    x = jnp.reshape(x, (B, C, rows_padded, 128))
    t = jnp.reshape(t, (B, rows_padded, 128))

    n_out = 3 * C + 1
    out = pl.pallas_call(
        _dice_ce_kernel,
        out_shape=jax.ShapeDtypeStruct((B, ns, n_out, 8, 128), jnp.float32),
        grid_spec=pltpu.PrefetchScalarGridSpec(
            num_scalar_prefetch=0,
            grid=(B, ns, tiles_per_split),
            in_specs=[
                pl.BlockSpec((None, C, tile_rows, 128),
                             lambda b, h, s: (b, 0, h * tiles_per_split + s, 0)),
                pl.BlockSpec((None, tile_rows, 128),
                             lambda b, h, s: (b, h * tiles_per_split + s, 0)),
            ],
            out_specs=pl.BlockSpec((None, None, n_out, 8, 128),
                                   lambda b, h, s: (b, h, 0, 0, 0)),
        ),
        compiler_params=pltpu.CompilerParams(
            dimension_semantics=("parallel", "parallel", "arbitrary"),
            vmem_limit_bytes=vmem_limit,
        ),
        cost_estimate=pl.CostEstimate(
            flops=B * S_pad * (14 * C + 12),
            transcendentals=B * S_pad * (C + 2),
            bytes_accessed=(B * C * S_pad * itemsize + B * S_pad * t_itemsize
                            + B * ns * n_out * 8 * 128 * 4),
        ),
    )(x, t)

    # ---- wrapper finalize: collapse vreg slabs + splits, dice ratio, means ----
    sums = jnp.sum(out, axis=(1, 3, 4))            # (B, 3C+1)
    inter = sums[:, 0:C]
    p2 = sums[:, C:2 * C]
    tsum = sums[:, 2 * C:3 * C]
    ce = sums[:, 3 * C]
    dice = 1.0 - (2.0 * inter + SMOOTH) / (p2 + tsum + SMOOTH)       # (B, C)
    dice_loss = jnp.mean(dice)
    ce_loss = jnp.sum(ce) / jnp.float32(B * S)
    return LAMBDA_DICE * dice_loss + LAMBDA_CE * ce_loss


def _reference(logits, targets):
    """Pure-JAX reference mirroring the PyTorch DiceCELoss (for verification)."""
    C = logits.shape[1]
    x = logits.astype(jnp.float32)
    tgt = jnp.reshape(targets, (targets.shape[0],) + targets.shape[2:]).astype(jnp.int32)
    p = jax.nn.softmax(x, axis=1)
    onehot = jnp.moveaxis(jax.nn.one_hot(tgt, C, dtype=jnp.float32), -1, 1)
    reduce_axes = tuple(range(2, x.ndim))
    inter = jnp.sum(p * onehot, axis=reduce_axes)
    denom = jnp.sum(p * p, axis=reduce_axes) + jnp.sum(onehot, axis=reduce_axes)
    dice = jnp.mean(1.0 - (2.0 * inter + SMOOTH) / (denom + SMOOTH))
    logp = jax.nn.log_softmax(x, axis=1)
    ce = -jnp.mean(jnp.sum(onehot * logp, axis=1))
    return LAMBDA_DICE * dice + LAMBDA_CE * ce


if __name__ == "__main__":
    key = jax.random.PRNGKey(0)
    k1, k2 = jax.random.split(key)
    B, C, D, H, W = 2, 4, 8, 8, 8
    logits = jax.random.normal(k1, (B, C, D, H, W), dtype=jnp.float32)
    targets = jax.random.randint(k2, (B, 1, D, H, W), 0, C, dtype=jnp.int32)

    loss = jax.block_until_ready(dice_ce_loss(logits, targets))
    ref = jax.block_until_ready(_reference(logits, targets))
    np.testing.assert_allclose(np.asarray(loss), np.asarray(ref),
                               rtol=1e-5, atol=1e-5)
    print("KERNEL_OK")
</pallas_src>

<mosaic_0001>
module attributes {stable_mosaic.version = 11 : i64} {
  func.func @_dice_ce_kernel(%arg0: i32, %arg1: i32, %arg2: i32, %arg3: memref<1x4x32x128xf32, #tpu.memory_space<vmem>>, %arg4: memref<1x32x128xi8, #tpu.memory_space<vmem>>, %arg5: memref<1x1x13x8x128xf32, #tpu.memory_space<vmem>>) attributes {dimension_semantics = [#tpu.dimension_semantics<parallel>, #tpu.dimension_semantics<parallel>, #tpu.dimension_semantics<arbitrary>], iteration_bounds = array<i64: 2, 1, 1>, scalar_prefetch = 0 : i64, scratch_operands = 0 : i64, tpu.core_type = #tpu.core_type<tc>, window_params = [{transform_indices = @transform_0, window_bounds = array<i64: 1, 4, 32, 128>}, {transform_indices = @transform_1, window_bounds = array<i64: 1, 32, 128>}, {transform_indices = @transform_2, window_bounds = array<i64: 1, 1, 13, 8, 128>}]} {
    %c0_i32 = arith.constant 0 : i32
    %0 = arith.cmpi eq, %arg2, %c0_i32 : i32
    %1 = arith.extui %0 : i1 to i32
    %c0_i32_0 = arith.constant 0 : i32
    %2 = arith.cmpi ne, %1, %c0_i32_0 : i32
    scf.if %2 {
      %cst_185 = arith.constant 0.000000e+00 : f32
      %202 = vector.broadcast %cst_185 : f32 to vector<13x8x128xf32>
      %c0_186 = arith.constant 0 : index
      %c0_187 = arith.constant 0 : index
      %c0_188 = arith.constant 0 : index
      %c0_189 = arith.constant 0 : index
      %c0_190 = arith.constant 0 : index
      %203 = vector.load %arg5[%c0_186, %c0_187, %c0_188, %c0_189, %c0_190] : memref<1x1x13x8x128xf32, #tpu.memory_space<vmem>>, vector<1x1x13x8x128xf32>
      %204 = vector.shape_cast %203 : vector<1x1x13x8x128xf32> to vector<13x8x128xf32>
      %205 = vector.shape_cast %202 : vector<13x8x128xf32> to vector<1x1x13x8x128xf32>
      tpu.vector_store %arg5[%c0_186, %c0_187, %c0_188, %c0_189, %c0_190], %205 {strides = array<i32>} : memref<1x1x13x8x128xf32, #tpu.memory_space<vmem>>, vector<1x1x13x8x128xf32>,
    } else {
    }
    %c0 = arith.constant 0 : index
    %c0_1 = arith.constant 0 : index
    %c0_2 = arith.constant 0 : index
    %c0_3 = arith.constant 0 : index
    %3 = vector.load %arg3[%c0, %c0_1, %c0_2, %c0_3] : memref<1x4x32x128xf32, #tpu.memory_space<vmem>>, vector<1x1x32x128xf32>
    %4 = vector.shape_cast %3 : vector<1x1x32x128xf32> to vector<32x128xf32>
    %c0_4 = arith.constant 0 : index
    %c1 = arith.constant 1 : index
    %c0_5 = arith.constant 0 : index
    %c0_6 = arith.constant 0 : index
    %5 = vector.load %arg3[%c0_4, %c1, %c0_5, %c0_6] : memref<1x4x32x128xf32, #tpu.memory_space<vmem>>, vector<1x1x32x128xf32>
    %6 = vector.shape_cast %5 : vector<1x1x32x128xf32> to vector<32x128xf32>
    %7 = arith.maximumf %4, %6 : vector<32x128xf32>
    %c0_7 = arith.constant 0 : index
    %c2 = arith.constant 2 : index
    %c0_8 = arith.constant 0 : index
    %c0_9 = arith.constant 0 : index
    %8 = vector.load %arg3[%c0_7, %c2, %c0_8, %c0_9] : memref<1x4x32x128xf32, #tpu.memory_space<vmem>>, vector<1x1x32x128xf32>
    %9 = vector.shape_cast %8 : vector<1x1x32x128xf32> to vector<32x128xf32>
    %10 = arith.maximumf %7, %9 : vector<32x128xf32>
    %c0_10 = arith.constant 0 : index
    %c3 = arith.constant 3 : index
    %c0_11 = arith.constant 0 : index
    %c0_12 = arith.constant 0 : index
    %11 = vector.load %arg3[%c0_10, %c3, %c0_11, %c0_12] : memref<1x4x32x128xf32, #tpu.memory_space<vmem>>, vector<1x1x32x128xf32>
    %12 = vector.shape_cast %11 : vector<1x1x32x128xf32> to vector<32x128xf32>
    %13 = arith.maximumf %10, %12 : vector<32x128xf32>
    %c0_13 = arith.constant 0 : index
    %c0_14 = arith.constant 0 : index
    %c0_15 = arith.constant 0 : index
    %c0_16 = arith.constant 0 : index
    %14 = vector.load %arg3[%c0_13, %c0_14, %c0_15, %c0_16] : memref<1x4x32x128xf32, #tpu.memory_space<vmem>>, vector<1x1x32x128xf32>
    %15 = vector.shape_cast %14 : vector<1x1x32x128xf32> to vector<32x128xf32>
    %16 = arith.subf %15, %13 : vector<32x128xf32>
    %17 = math.exp %16 : vector<32x128xf32>
    %c0_17 = arith.constant 0 : index
    %c1_18 = arith.constant 1 : index
    %c0_19 = arith.constant 0 : index
    %c0_20 = arith.constant 0 : index
    %18 = vector.load %arg3[%c0_17, %c1_18, %c0_19, %c0_20] : memref<1x4x32x128xf32, #tpu.memory_space<vmem>>, vector<1x1x32x128xf32>
    %19 = vector.shape_cast %18 : vector<1x1x32x128xf32> to vector<32x128xf32>
    %20 = arith.subf %19, %13 : vector<32x128xf32>
    %21 = math.exp %20 : vector<32x128xf32>
    %22 = arith.addf %17, %21 : vector<32x128xf32>
    %c0_21 = arith.constant 0 : index
    %c2_22 = arith.constant 2 : index
    %c0_23 = arith.constant 0 : index
    %c0_24 = arith.constant 0 : index
    %23 = vector.load %arg3[%c0_21, %c2_22, %c0_23, %c0_24] : memref<1x4x32x128xf32, #tpu.memory_space<vmem>>, vector<1x1x32x128xf32>
    %24 = vector.shape_cast %23 : vector<1x1x32x128xf32> to vector<32x128xf32>
    %25 = arith.subf %24, %13 : vector<32x128xf32>
    %26 = math.exp %25 : vector<32x128xf32>
    %27 = arith.addf %22, %26 : vector<32x128xf32>
    %c0_25 = arith.constant 0 : index
    %c3_26 = arith.constant 3 : index
    %c0_27 = arith.constant 0 : index
    %c0_28 = arith.constant 0 : index
    %28 = vector.load %arg3[%c0_25, %c3_26, %c0_27, %c0_28] : memref<1x4x32x128xf32, #tpu.memory_space<vmem>>, vector<1x1x32x128xf32>
    %29 = vector.shape_cast %28 : vector<1x1x32x128xf32> to vector<32x128xf32>
    %30 = arith.subf %29, %13 : vector<32x128xf32>
    %31 = math.exp %30 : vector<32x128xf32>
    %32 = arith.addf %27, %31 : vector<32x128xf32>
    %33 = tpu.reciprocal %32 {approx = true} : vector<32x128xf32> -> vector<32x128xf32>
    %34 = arith.mulf %32, %33 : vector<32x128xf32>
    %cst = arith.constant 2.000000e+00 : f32
    %35 = vector.broadcast %cst : f32 to vector<32x128xf32>
    %36 = arith.subf %35, %34 : vector<32x128xf32>
    %37 = arith.mulf %33, %36 : vector<32x128xf32>
    %38 = math.log %32 : vector<32x128xf32>
    %c0_29 = arith.constant 0 : index
    %c0_30 = arith.constant 0 : index
    %c0_31 = arith.constant 0 : index
    %39 = vector.load %arg4[%c0_29, %c0_30, %c0_31] : memref<1x32x128xi8, #tpu.memory_space<vmem>>, vector<1x32x128xi8>
    %40 = vector.shape_cast %39 : vector<1x32x128xi8> to vector<32x128xi8>
    %41 = arith.extsi %40 : vector<32x128xi8> to vector<32x128xi32>
    %c0_i32_32 = arith.constant 0 : i32
    %42 = vector.broadcast %c0_i32_32 : i32 to vector<32x128xi32>
    %43 = arith.cmpi sge, %41, %42 : vector<32x128xi32>
    %44 = arith.extui %43 : vector<32x128xi1> to vector<32x128xi32>
    %45 = arith.sitofp %44 : vector<32x128xi32> to vector<32x128xf32>
    %cst_33 = arith.constant 0.000000e+00 : f32
    %46 = vector.broadcast %cst_33 : f32 to vector<32x128xf32>
    %c0_i32_34 = arith.constant 0 : i32
    %47 = vector.broadcast %c0_i32_34 : i32 to vector<32x128xi32>
    %48 = arith.cmpi eq, %41, %47 : vector<32x128xi32>
    %49 = arith.extui %48 : vector<32x128xi1> to vector<32x128xi32>
    %50 = arith.sitofp %49 : vector<32x128xi32> to vector<32x128xf32>
    %51 = arith.mulf %17, %37 : vector<32x128xf32>
    %c0_35 = arith.constant 0 : index
    %c0_36 = arith.constant 0 : index
    %c0_37 = arith.constant 0 : index
    %c0_38 = arith.constant 0 : index
    %c0_39 = arith.constant 0 : index
    %52 = vector.load %arg5[%c0_35, %c0_36, %c0_37, %c0_38, %c0_39] : memref<1x1x13x8x128xf32, #tpu.memory_space<vmem>>, vector<1x1x1x8x128xf32>
    %53 = vector.shape_cast %52 : vector<1x1x1x8x128xf32> to vector<8x128xf32>
    %54 = arith.mulf %51, %50 : vector<32x128xf32>
    %55 = vector.shape_cast %54 : vector<32x128xf32> to vector<4x8x128xf32>
    %cst_40 = arith.constant dense<0.000000e+00> : vector<8x128xf32>
    %56 = vector.multi_reduction <add>, %55, %cst_40 [0] : vector<4x8x128xf32> to vector<8x128xf32>
    %57 = arith.addf %53, %56 : vector<8x128xf32>
    %c0_41 = arith.constant 0 : index
    %c0_42 = arith.constant 0 : index
    %c0_43 = arith.constant 0 : index
    %c0_44 = arith.constant 0 : index
    %c0_45 = arith.constant 0 : index
    %58 = vector.load %arg5[%c0_41, %c0_42, %c0_43, %c0_44, %c0_45] : memref<1x1x13x8x128xf32, #tpu.memory_space<vmem>>, vector<1x1x1x8x128xf32>
    %59 = vector.shape_cast %58 : vector<1x1x1x8x128xf32> to vector<8x128xf32>
    %60 = vector.shape_cast %57 : vector<8x128xf32> to vector<1x1x1x8x128xf32>
    tpu.vector_store %arg5[%c0_41, %c0_42, %c0_43, %c0_44, %c0_45], %60 {strides = array<i32>} : memref<1x1x13x8x128xf32, #tpu.memory_space<vmem>>, vector<1x1x1x8x128xf32>,
    %c0_46 = arith.constant 0 : index
    %c0_47 = arith.constant 0 : index
    %c4 = arith.constant 4 : index
    %c0_48 = arith.constant 0 : index
    %c0_49 = arith.constant 0 : index
    %61 = vector.load %arg5[%c0_46, %c0_47, %c4, %c0_48, %c0_49] : memref<1x1x13x8x128xf32, #tpu.memory_space<vmem>>, vector<1x1x1x8x128xf32>
    %62 = vector.shape_cast %61 : vector<1x1x1x8x128xf32> to vector<8x128xf32>
    %63 = arith.mulf %51, %51 : vector<32x128xf32>
    %64 = arith.mulf %63, %45 : vector<32x128xf32>
    %65 = vector.shape_cast %64 : vector<32x128xf32> to vector<4x8x128xf32>
    %cst_50 = arith.constant dense<0.000000e+00> : vector<8x128xf32>
    %66 = vector.multi_reduction <add>, %65, %cst_50 [0] : vector<4x8x128xf32> to vector<8x128xf32>
    %67 = arith.addf %62, %66 : vector<8x128xf32>
    %c0_51 = arith.constant 0 : index
    %c0_52 = arith.constant 0 : index
    %c4_53 = arith.constant 4 : index
    %c0_54 = arith.constant 0 : index
    %c0_55 = arith.constant 0 : index
    %68 = vector.load %arg5[%c0_51, %c0_52, %c4_53, %c0_54, %c0_55] : memref<1x1x13x8x128xf32, #tpu.memory_space<vmem>>, vector<1x1x1x8x128xf32>
    %69 = vector.shape_cast %68 : vector<1x1x1x8x128xf32> to vector<8x128xf32>
    %70 = vector.shape_cast %67 : vector<8x128xf32> to vector<1x1x1x8x128xf32>
    tpu.vector_store %arg5[%c0_51, %c0_52, %c4_53, %c0_54, %c0_55], %70 {strides = array<i32>} : memref<1x1x13x8x128xf32, #tpu.memory_space<vmem>>, vector<1x1x1x8x128xf32>,
    %c0_56 = arith.constant 0 : index
    %c0_57 = arith.constant 0 : index
    %c8 = arith.constant 8 : index
    %c0_58 = arith.constant 0 : index
    %c0_59 = arith.constant 0 : index
    %71 = vector.load %arg5[%c0_56, %c0_57, %c8, %c0_58, %c0_59] : memref<1x1x13x8x128xf32, #tpu.memory_space<vmem>>, vector<1x1x1x8x128xf32>
    %72 = vector.shape_cast %71 : vector<1x1x1x8x128xf32> to vector<8x128xf32>
    %73 = vector.shape_cast %50 : vector<32x128xf32> to vector<4x8x128xf32>
    %cst_60 = arith.constant dense<0.000000e+00> : vector<8x128xf32>
    %74 = vector.multi_reduction <add>, %73, %cst_60 [0] : vector<4x8x128xf32> to vector<8x128xf32>
    %75 = arith.addf %72, %74 : vector<8x128xf32>
    %c0_61 = arith.constant 0 : index
    %c0_62 = arith.constant 0 : index
    %c8_63 = arith.constant 8 : index
    %c0_64 = arith.constant 0 : index
    %c0_65 = arith.constant 0 : index
    %76 = vector.load %arg5[%c0_61, %c0_62, %c8_63, %c0_64, %c0_65] : memref<1x1x13x8x128xf32, #tpu.memory_space<vmem>>, vector<1x1x1x8x128xf32>
    %77 = vector.shape_cast %76 : vector<1x1x1x8x128xf32> to vector<8x128xf32>
    %78 = vector.shape_cast %75 : vector<8x128xf32> to vector<1x1x1x8x128xf32>
    tpu.vector_store %arg5[%c0_61, %c0_62, %c8_63, %c0_64, %c0_65], %78 {strides = array<i32>} : memref<1x1x13x8x128xf32, #tpu.memory_space<vmem>>, vector<1x1x1x8x128xf32>,
    %c0_66 = arith.constant 0 : index
    %c0_67 = arith.constant 0 : index
    %c0_68 = arith.constant 0 : index
    %c0_69 = arith.constant 0 : index
    %79 = vector.load %arg3[%c0_66, %c0_67, %c0_68, %c0_69] : memref<1x4x32x128xf32, #tpu.memory_space<vmem>>, vector<1x1x32x128xf32>
    %80 = vector.shape_cast %79 : vector<1x1x32x128xf32> to vector<32x128xf32>
    %81 = arith.mulf %50, %80 : vector<32x128xf32>
    %82 = arith.addf %46, %81 : vector<32x128xf32>
    %c1_i32 = arith.constant 1 : i32
    %83 = vector.broadcast %c1_i32 : i32 to vector<32x128xi32>
    %84 = arith.cmpi eq, %41, %83 : vector<32x128xi32>
    %85 = arith.extui %84 : vector<32x128xi1> to vector<32x128xi32>
    %86 = arith.sitofp %85 : vector<32x128xi32> to vector<32x128xf32>
    %87 = arith.mulf %21, %37 : vector<32x128xf32>
    %c0_70 = arith.constant 0 : index
    %c0_71 = arith.constant 0 : index
    %c1_72 = arith.constant 1 : index
    %c0_73 = arith.constant 0 : index
    %c0_74 = arith.constant 0 : index
    %88 = vector.load %arg5[%c0_70, %c0_71, %c1_72, %c0_73, %c0_74] : memref<1x1x13x8x128xf32, #tpu.memory_space<vmem>>, vector<1x1x1x8x128xf32>
    %89 = vector.shape_cast %88 : vector<1x1x1x8x128xf32> to vector<8x128xf32>
    %90 = arith.mulf %87, %86 : vector<32x128xf32>
    %91 = vector.shape_cast %90 : vector<32x128xf32> to vector<4x8x128xf32>
    %cst_75 = arith.constant dense<0.000000e+00> : vector<8x128xf32>
    %92 = vector.multi_reduction <add>, %91, %cst_75 [0] : vector<4x8x128xf32> to vector<8x128xf32>
    %93 = arith.addf %89, %92 : vector<8x128xf32>
    %c0_76 = arith.constant 0 : index
    %c0_77 = arith.constant 0 : index
    %c1_78 = arith.constant 1 : index
    %c0_79 = arith.constant 0 : index
    %c0_80 = arith.constant 0 : index
    %94 = vector.load %arg5[%c0_76, %c0_77, %c1_78, %c0_79, %c0_80] : memref<1x1x13x8x128xf32, #tpu.memory_space<vmem>>, vector<1x1x1x8x128xf32>
    %95 = vector.shape_cast %94 : vector<1x1x1x8x128xf32> to vector<8x128xf32>
    %96 = vector.shape_cast %93 : vector<8x128xf32> to vector<1x1x1x8x128xf32>
    tpu.vector_store %arg5[%c0_76, %c0_77, %c1_78, %c0_79, %c0_80], %96 {strides = array<i32>} : memref<1x1x13x8x128xf32, #tpu.memory_space<vmem>>, vector<1x1x1x8x128xf32>,
    %c0_81 = arith.constant 0 : index
    %c0_82 = arith.constant 0 : index
    %c5 = arith.constant 5 : index
    %c0_83 = arith.constant 0 : index
    %c0_84 = arith.constant 0 : index
    %97 = vector.load %arg5[%c0_81, %c0_82, %c5, %c0_83, %c0_84] : memref<1x1x13x8x128xf32, #tpu.memory_space<vmem>>, vector<1x1x1x8x128xf32>
    %98 = vector.shape_cast %97 : vector<1x1x1x8x128xf32> to vector<8x128xf32>
    %99 = arith.mulf %87, %87 : vector<32x128xf32>
    %100 = arith.mulf %99, %45 : vector<32x128xf32>
    %101 = vector.shape_cast %100 : vector<32x128xf32> to vector<4x8x128xf32>
    %cst_85 = arith.constant dense<0.000000e+00> : vector<8x128xf32>
    %102 = vector.multi_reduction <add>, %101, %cst_85 [0] : vector<4x8x128xf32> to vector<8x128xf32>
    %103 = arith.addf %98, %102 : vector<8x128xf32>
    %c0_86 = arith.constant 0 : index
    %c0_87 = arith.constant 0 : index
    %c5_88 = arith.constant 5 : index
    %c0_89 = arith.constant 0 : index
    %c0_90 = arith.constant 0 : index
    %104 = vector.load %arg5[%c0_86, %c0_87, %c5_88, %c0_89, %c0_90] : memref<1x1x13x8x128xf32, #tpu.memory_space<vmem>>, vector<1x1x1x8x128xf32>
    %105 = vector.shape_cast %104 : vector<1x1x1x8x128xf32> to vector<8x128xf32>
    %106 = vector.shape_cast %103 : vector<8x128xf32> to vector<1x1x1x8x128xf32>
    tpu.vector_store %arg5[%c0_86, %c0_87, %c5_88, %c0_89, %c0_90], %106 {strides = array<i32>} : memref<1x1x13x8x128xf32, #tpu.memory_space<vmem>>, vector<1x1x1x8x128xf32>,
    %c0_91 = arith.constant 0 : index
    %c0_92 = arith.constant 0 : index
    %c9 = arith.constant 9 : index
    %c0_93 = arith.constant 0 : index
    %c0_94 = arith.constant 0 : index
    %107 = vector.load %arg5[%c0_91, %c0_92, %c9, %c0_93, %c0_94] : memref<1x1x13x8x128xf32, #tpu.memory_space<vmem>>, vector<1x1x1x8x128xf32>
    %108 = vector.shape_cast %107 : vector<1x1x1x8x128xf32> to vector<8x128xf32>
    %109 = vector.shape_cast %86 : vector<32x128xf32> to vector<4x8x128xf32>
    %cst_95 = arith.constant dense<0.000000e+00> : vector<8x128xf32>
    %110 = vector.multi_reduction <add>, %109, %cst_95 [0] : vector<4x8x128xf32> to vector<8x128xf32>
    %111 = arith.addf %108, %110 : vector<8x128xf32>
    %c0_96 = arith.constant 0 : index
    %c0_97 = arith.constant 0 : index
    %c9_98 = arith.constant 9 : index
    %c0_99 = arith.constant 0 : index
    %c0_100 = arith.constant 0 : index
    %112 = vector.load %arg5[%c0_96, %c0_97, %c9_98, %c0_99, %c0_100] : memref<1x1x13x8x128xf32, #tpu.memory_space<vmem>>, vector<1x1x1x8x128xf32>
    %113 = vector.shape_cast %112 : vector<1x1x1x8x128xf32> to vector<8x128xf32>
    %114 = vector.shape_cast %111 : vector<8x128xf32> to vector<1x1x1x8x128xf32>
    tpu.vector_store %arg5[%c0_96, %c0_97, %c9_98, %c0_99, %c0_100], %114 {strides = array<i32>} : memref<1x1x13x8x128xf32, #tpu.memory_space<vmem>>, vector<1x1x1x8x128xf32>,
    %c0_101 = arith.constant 0 : index
    %c1_102 = arith.constant 1 : index
    %c0_103 = arith.constant 0 : index
    %c0_104 = arith.constant 0 : index
    %115 = vector.load %arg3[%c0_101, %c1_102, %c0_103, %c0_104] : memref<1x4x32x128xf32, #tpu.memory_space<vmem>>, vector<1x1x32x128xf32>
    %116 = vector.shape_cast %115 : vector<1x1x32x128xf32> to vector<32x128xf32>
    %117 = arith.mulf %86, %116 : vector<32x128xf32>
    %118 = arith.addf %82, %117 : vector<32x128xf32>
    %c2_i32 = arith.constant 2 : i32
    %119 = vector.broadcast %c2_i32 : i32 to vector<32x128xi32>
    %120 = arith.cmpi eq, %41, %119 : vector<32x128xi32>
    %121 = arith.extui %120 : vector<32x128xi1> to vector<32x128xi32>
    %122 = arith.sitofp %121 : vector<32x128xi32> to vector<32x128xf32>
    %123 = arith.mulf %26, %37 : vector<32x128xf32>
    %c0_105 = arith.constant 0 : index
    %c0_106 = arith.constant 0 : index
    %c2_107 = arith.constant 2 : index
    %c0_108 = arith.constant 0 : index
    %c0_109 = arith.constant 0 : index
    %124 = vector.load %arg5[%c0_105, %c0_106, %c2_107, %c0_108, %c0_109] : memref<1x1x13x8x128xf32, #tpu.memory_space<vmem>>, vector<1x1x1x8x128xf32>
    %125 = vector.shape_cast %124 : vector<1x1x1x8x128xf32> to vector<8x128xf32>
    %126 = arith.mulf %123, %122 : vector<32x128xf32>
    %127 = vector.shape_cast %126 : vector<32x128xf32> to vector<4x8x128xf32>
    %cst_110 = arith.constant dense<0.000000e+00> : vector<8x128xf32>
    %128 = vector.multi_reduction <add>, %127, %cst_110 [0] : vector<4x8x128xf32> to vector<8x128xf32>
    %129 = arith.addf %125, %128 : vector<8x128xf32>
    %c0_111 = arith.constant 0 : index
    %c0_112 = arith.constant 0 : index
    %c2_113 = arith.constant 2 : index
    %c0_114 = arith.constant 0 : index
    %c0_115 = arith.constant 0 : index
    %130 = vector.load %arg5[%c0_111, %c0_112, %c2_113, %c0_114, %c0_115] : memref<1x1x13x8x128xf32, #tpu.memory_space<vmem>>, vector<1x1x1x8x128xf32>
    %131 = vector.shape_cast %130 : vector<1x1x1x8x128xf32> to vector<8x128xf32>
    %132 = vector.shape_cast %129 : vector<8x128xf32> to vector<1x1x1x8x128xf32>
    tpu.vector_store %arg5[%c0_111, %c0_112, %c2_113, %c0_114, %c0_115], %132 {strides = array<i32>} : memref<1x1x13x8x128xf32, #tpu.memory_space<vmem>>, vector<1x1x1x8x128xf32>,
    %c0_116 = arith.constant 0 : index
    %c0_117 = arith.constant 0 : index
    %c6 = arith.constant 6 : index
    %c0_118 = arith.constant 0 : index
    %c0_119 = arith.constant 0 : index
    %133 = vector.load %arg5[%c0_116, %c0_117, %c6, %c0_118, %c0_119] : memref<1x1x13x8x128xf32, #tpu.memory_space<vmem>>, vector<1x1x1x8x128xf32>
    %134 = vector.shape_cast %133 : vector<1x1x1x8x128xf32> to vector<8x128xf32>
    %135 = arith.mulf %123, %123 : vector<32x128xf32>
    %136 = arith.mulf %135, %45 : vector<32x128xf32>
    %137 = vector.shape_cast %136 : vector<32x128xf32> to vector<4x8x128xf32>
    %cst_120 = arith.constant dense<0.000000e+00> : vector<8x128xf32>
    %138 = vector.multi_reduction <add>, %137, %cst_120 [0] : vector<4x8x128xf32> to vector<8x128xf32>
    %139 = arith.addf %134, %138 : vector<8x128xf32>
    %c0_121 = arith.constant 0 : index
    %c0_122 = arith.constant 0 : index
    %c6_123 = arith.constant 6 : index
    %c0_124 = arith.constant 0 : index
    %c0_125 = arith.constant 0 : index
    %140 = vector.load %arg5[%c0_121, %c0_122, %c6_123, %c0_124, %c0_125] : memref<1x1x13x8x128xf32, #tpu.memory_space<vmem>>, vector<1x1x1x8x128xf32>
    %141 = vector.shape_cast %140 : vector<1x1x1x8x128xf32> to vector<8x128xf32>
    %142 = vector.shape_cast %139 : vector<8x128xf32> to vector<1x1x1x8x128xf32>
    tpu.vector_store %arg5[%c0_121, %c0_122, %c6_123, %c0_124, %c0_125], %142 {strides = array<i32>} : memref<1x1x13x8x128xf32, #tpu.memory_space<vmem>>, vector<1x1x1x8x128xf32>,
    %c0_126 = arith.constant 0 : index
    %c0_127 = arith.constant 0 : index
    %c10 = arith.constant 10 : index
    %c0_128 = arith.constant 0 : index
    %c0_129 = arith.constant 0 : index
    %143 = vector.load %arg5[%c0_126, %c0_127, %c10, %c0_128, %c0_129] : memref<1x1x13x8x128xf32, #tpu.memory_space<vmem>>, vector<1x1x1x8x128xf32>
    %144 = vector.shape_cast %143 : vector<1x1x1x8x128xf32> to vector<8x128xf32>
    %145 = vector.shape_cast %122 : vector<32x128xf32> to vector<4x8x128xf32>
    %cst_130 = arith.constant dense<0.000000e+00> : vector<8x128xf32>
    %146 = vector.multi_reduction <add>, %145, %cst_130 [0] : vector<4x8x128xf32> to vector<8x128xf32>
    %147 = arith.addf %144, %146 : vector<8x128xf32>
    %c0_131 = arith.constant 0 : index
    %c0_132 = arith.constant 0 : index
    %c10_133 = arith.constant 10 : index
    %c0_134 = arith.constant 0 : index
    %c0_135 = arith.constant 0 : index
    %148 = vector.load %arg5[%c0_131, %c0_132, %c10_133, %c0_134, %c0_135] : memref<1x1x13x8x128xf32, #tpu.memory_space<vmem>>, vector<1x1x1x8x128xf32>
    %149 = vector.shape_cast %148 : vector<1x1x1x8x128xf32> to vector<8x128xf32>
    %150 = vector.shape_cast %147 : vector<8x128xf32> to vector<1x1x1x8x128xf32>
    tpu.vector_store %arg5[%c0_131, %c0_132, %c10_133, %c0_134, %c0_135], %150 {strides = array<i32>} : memref<1x1x13x8x128xf32, #tpu.memory_space<vmem>>, vector<1x1x1x8x128xf32>,
    %c0_136 = arith.constant 0 : index
    %c2_137 = arith.constant 2 : index
    %c0_138 = arith.constant 0 : index
    %c0_139 = arith.constant 0 : index
    %151 = vector.load %arg3[%c0_136, %c2_137, %c0_138, %c0_139] : memref<1x4x32x128xf32, #tpu.memory_space<vmem>>, vector<1x1x32x128xf32>
    %152 = vector.shape_cast %151 : vector<1x1x32x128xf32> to vector<32x128xf32>
    %153 = arith.mulf %122, %152 : vector<32x128xf32>
    %154 = arith.addf %118, %153 : vector<32x128xf32>
    %c3_i32 = arith.constant 3 : i32
    %155 = vector.broadcast %c3_i32 : i32 to vector<32x128xi32>
    %156 = arith.cmpi eq, %41, %155 : vector<32x128xi32>
    %157 = arith.extui %156 : vector<32x128xi1> to vector<32x128xi32>
    %158 = arith.sitofp %157 : vector<32x128xi32> to vector<32x128xf32>
    %159 = arith.mulf %31, %37 : vector<32x128xf32>
    %c0_140 = arith.constant 0 : index
    %c0_141 = arith.constant 0 : index
    %c3_142 = arith.constant 3 : index
    %c0_143 = arith.constant 0 : index
    %c0_144 = arith.constant 0 : index
    %160 = vector.load %arg5[%c0_140, %c0_141, %c3_142, %c0_143, %c0_144] : memref<1x1x13x8x128xf32, #tpu.memory_space<vmem>>, vector<1x1x1x8x128xf32>
    %161 = vector.shape_cast %160 : vector<1x1x1x8x128xf32> to vector<8x128xf32>
    %162 = arith.mulf %159, %158 : vector<32x128xf32>
    %163 = vector.shape_cast %162 : vector<32x128xf32> to vector<4x8x128xf32>
    %cst_145 = arith.constant dense<0.000000e+00> : vector<8x128xf32>
    %164 = vector.multi_reduction <add>, %163, %cst_145 [0] : vector<4x8x128xf32> to vector<8x128xf32>
    %165 = arith.addf %161, %164 : vector<8x128xf32>
    %c0_146 = arith.constant 0 : index
    %c0_147 = arith.constant 0 : index
    %c3_148 = arith.constant 3 : index
    %c0_149 = arith.constant 0 : index
    %c0_150 = arith.constant 0 : index
    %166 = vector.load %arg5[%c0_146, %c0_147, %c3_148, %c0_149, %c0_150] : memref<1x1x13x8x128xf32, #tpu.memory_space<vmem>>, vector<1x1x1x8x128xf32>
    %167 = vector.shape_cast %166 : vector<1x1x1x8x128xf32> to vector<8x128xf32>
    %168 = vector.shape_cast %165 : vector<8x128xf32> to vector<1x1x1x8x128xf32>
    tpu.vector_store %arg5[%c0_146, %c0_147, %c3_148, %c0_149, %c0_150], %168 {strides = array<i32>} : memref<1x1x13x8x128xf32, #tpu.memory_space<vmem>>, vector<1x1x1x8x128xf32>,
    %c0_151 = arith.constant 0 : index
    %c0_152 = arith.constant 0 : index
    %c7 = arith.constant 7 : index
    %c0_153 = arith.constant 0 : index
    %c0_154 = arith.constant 0 : index
    %169 = vector.load %arg5[%c0_151, %c0_152, %c7, %c0_153, %c0_154] : memref<1x1x13x8x128xf32, #tpu.memory_space<vmem>>, vector<1x1x1x8x128xf32>
    %170 = vector.shape_cast %169 : vector<1x1x1x8x128xf32> to vector<8x128xf32>
    %171 = arith.mulf %159, %159 : vector<32x128xf32>
    %172 = arith.mulf %171, %45 : vector<32x128xf32>
    %173 = vector.shape_cast %172 : vector<32x128xf32> to vector<4x8x128xf32>
    %cst_155 = arith.constant dense<0.000000e+00> : vector<8x128xf32>
    %174 = vector.multi_reduction <add>, %173, %cst_155 [0] : vector<4x8x128xf32> to vector<8x128xf32>
    %175 = arith.addf %170, %174 : vector<8x128xf32>
    %c0_156 = arith.constant 0 : index
    %c0_157 = arith.constant 0 : index
    %c7_158 = arith.constant 7 : index
    %c0_159 = arith.constant 0 : index
    %c0_160 = arith.constant 0 : index
    %176 = vector.load %arg5[%c0_156, %c0_157, %c7_158, %c0_159, %c0_160] : memref<1x1x13x8x128xf32, #tpu.memory_space<vmem>>, vector<1x1x1x8x128xf32>
    %177 = vector.shape_cast %176 : vector<1x1x1x8x128xf32> to vector<8x128xf32>
    %178 = vector.shape_cast %175 : vector<8x128xf32> to vector<1x1x1x8x128xf32>
    tpu.vector_store %arg5[%c0_156, %c0_157, %c7_158, %c0_159, %c0_160], %178 {strides = array<i32>} : memref<1x1x13x8x128xf32, #tpu.memory_space<vmem>>, vector<1x1x1x8x128xf32>,
    %c0_161 = arith.constant 0 : index
    %c0_162 = arith.constant 0 : index
    %c11 = arith.constant 11 : index
    %c0_163 = arith.constant 0 : index
    %c0_164 = arith.constant 0 : index
    %179 = vector.load %arg5[%c0_161, %c0_162, %c11, %c0_163, %c0_164] : memref<1x1x13x8x128xf32, #tpu.memory_space<vmem>>, vector<1x1x1x8x128xf32>
    %180 = vector.shape_cast %179 : vector<1x1x1x8x128xf32> to vector<8x128xf32>
    %181 = vector.shape_cast %158 : vector<32x128xf32> to vector<4x8x128xf32>
    %cst_165 = arith.constant dense<0.000000e+00> : vector<8x128xf32>
    %182 = vector.multi_reduction <add>, %181, %cst_165 [0] : vector<4x8x128xf32> to vector<8x128xf32>
    %183 = arith.addf %180, %182 : vector<8x128xf32>
    %c0_166 = arith.constant 0 : index
    %c0_167 = arith.constant 0 : index
    %c11_168 = arith.constant 11 : index
    %c0_169 = arith.constant 0 : index
    %c0_170 = arith.constant 0 : index
    %184 = vector.load %arg5[%c0_166, %c0_167, %c11_168, %c0_169, %c0_170] : memref<1x1x13x8x128xf32, #tpu.memory_space<vmem>>, vector<1x1x1x8x128xf32>
    %185 = vector.shape_cast %184 : vector<1x1x1x8x128xf32> to vector<8x128xf32>
    %186 = vector.shape_cast %183 : vector<8x128xf32> to vector<1x1x1x8x128xf32>
    tpu.vector_store %arg5[%c0_166, %c0_167, %c11_168, %c0_169, %c0_170], %186 {strides = array<i32>} : memref<1x1x13x8x128xf32, #tpu.memory_space<vmem>>, vector<1x1x1x8x128xf32>,
    %c0_171 = arith.constant 0 : index
    %c3_172 = arith.constant 3 : index
    %c0_173 = arith.constant 0 : index
    %c0_174 = arith.constant 0 : index
    %187 = vector.load %arg3[%c0_171, %c3_172, %c0_173, %c0_174] : memref<1x4x32x128xf32, #tpu.memory_space<vmem>>, vector<1x1x32x128xf32>
    %188 = vector.shape_cast %187 : vector<1x1x32x128xf32> to vector<32x128xf32>
    %189 = arith.mulf %158, %188 : vector<32x128xf32>
    %190 = arith.addf %154, %189 : vector<32x128xf32>
    %c0_175 = arith.constant 0 : index
    %c0_176 = arith.constant 0 : index
    %c12 = arith.constant 12 : index
    %c0_177 = arith.constant 0 : index
    %c0_178 = arith.constant 0 : index
    %191 = vector.load %arg5[%c0_175, %c0_176, %c12, %c0_177, %c0_178] : memref<1x1x13x8x128xf32, #tpu.memory_space<vmem>>, vector<1x1x1x8x128xf32>
    %192 = vector.shape_cast %191 : vector<1x1x1x8x128xf32> to vector<8x128xf32>
    %193 = arith.addf %38, %13 : vector<32x128xf32>
    %194 = arith.mulf %45, %193 : vector<32x128xf32>
    %195 = arith.subf %194, %190 : vector<32x128xf32>
    %196 = vector.shape_cast %195 : vector<32x128xf32> to vector<4x8x128xf32>
    %cst_179 = arith.constant dense<0.000000e+00> : vector<8x128xf32>
    %197 = vector.multi_reduction <add>, %196, %cst_179 [0] : vector<4x8x128xf32> to vector<8x128xf32>
    %198 = arith.addf %192, %197 : vector<8x128xf32>
    %c0_180 = arith.constant 0 : index
    %c0_181 = arith.constant 0 : index
    %c12_182 = arith.constant 12 : index
    %c0_183 = arith.constant 0 : index
    %c0_184 = arith.constant 0 : index
    %199 = vector.load %arg5[%c0_180, %c0_181, %c12_182, %c0_183, %c0_184] : memref<1x1x13x8x128xf32, #tpu.memory_space<vmem>>, vector<1x1x1x8x128xf32>
    %200 = vector.shape_cast %199 : vector<1x1x1x8x128xf32> to vector<8x128xf32>
    %201 = vector.shape_cast %198 : vector<8x128xf32> to vector<1x1x1x8x128xf32>
    tpu.vector_store %arg5[%c0_180, %c0_181, %c12_182, %c0_183, %c0_184], %201 {strides = array<i32>} : memref<1x1x13x8x128xf32, #tpu.memory_space<vmem>>, vector<1x1x1x8x128xf32>,
    return
  }
  func.func @transform_0(%arg0: i32, %arg1: i32, %arg2: i32) -> (i32, i32, i32, i32) {
    %c1_i32 = arith.constant 1 : i32
    %0 = arith.muli %arg1, %c1_i32 : i32
    %1 = arith.addi %0, %arg2 : i32
    %c0_i32 = arith.constant 0 : i32
    %c0_i32_0 = arith.constant 0 : i32
    %c0_i32_1 = arith.constant 0 : i32
    return %arg0, %c0_i32, %1, %c0_i32_0 : i32, i32, i32, i32
  }
  func.func @transform_1(%arg0: i32, %arg1: i32, %arg2: i32) -> (i32, i32, i32) {
    %c1_i32 = arith.constant 1 : i32
    %0 = arith.muli %arg1, %c1_i32 : i32
    %1 = arith.addi %0, %arg2 : i32
    %c0_i32 = arith.constant 0 : i32
    %c0_i32_0 = arith.constant 0 : i32
    return %arg0, %1, %c0_i32 : i32, i32, i32
  }
  func.func @transform_2(%arg0: i32, %arg1: i32, %arg2: i32) -> (i32, i32, i32, i32, i32) {
    %c0_i32 = arith.constant 0 : i32
    %c0_i32_0 = arith.constant 0 : i32
    %c0_i32_1 = arith.constant 0 : i32
    %c0_i32_2 = arith.constant 0 : i32
    return %arg0, %arg1, %c0_i32, %c0_i32_0, %c0_i32_1 : i32, i32, i32, i32, i32
  }
}

</mosaic_0001>

<bundles_post_ra>
// kernel: tpu_custom_call.1
= control target key start
LH: loop header
LB: loop body
LE: loop exit
PB: predicated region body
PF: predicated region fallthrough
CT: control target
= control target key end

     0   :  { %7 = vsyncpa [#allocation3], 0  ;;  %s1808_s0 = inlined_call_operand.hbm [shape: f32[2,4,32,128], index: 0, kind: input, shape index: {}]   ;;  %s1809_s1 = inlined_call_operand.hbm [shape: s8[2,32,128], index: 1, kind: input, shape index: {}]   ;;  %s1810_s2 = inlined_call_operand.hbm [shape: f32[2,1,13,8,128], index: 2, kind: output, shape index: {}]  }
   0x1   :  { %9 = vsyncpa [#allocation3 + $0x1], 0 }
   0x2   :  { %10 = vsyncpa [#allocation6], 0 }
   0x3   :  { %12 = vsyncpa [#allocation6 + $0x1], 0 }
   0x4   :  { %13 = vsyncpa [#allocation4], 0 }
   0x5   :  { %15 = vsyncpa [#allocation4 + $0x1], 0  ;;  %s1156_s9 = smov 0   ;;  %s1158_s10 = smov 0  }
   0x6   :  { %s1160_s11 = smov 0   ;;  %s1162_s12 = smov 0  }
   0x7   :  { %s1164_s13 = smov 0   ;;  %s1166_s14 = smov 0  }
   0x8 LB: > { %s779_s15 = sadd.s32 4294967295, %s1131_s14   ;;  %s780_s16 = sadd.s32 4294967294, %s1131_s14   ;;  %s1131_s14 = sphi %s1166_s14, %s21_s14   ;;  %s1127_s13 = sphi %s1164_s13, %s1847_s13   ;;  %s1123_s12 = sphi %s1162_s12, %s1846_s12   ;;  %s1119_s11 = sphi %s1160_s11, %s1845_s11   ;;  %s1115_s10 = sphi %s1158_s10, %s1844_s10   ;;  %s1111_s9 = sphi %s1156_s9, %s1843_s9  }
   0x9   : > { %s40_s17 = sadd.s32 1, %s1127_s13  ;;  %s51_s18 = sadd.s32 1, %s1119_s11 }
   0xa   : > { %p42_p0 = scmp.ge.s32.totalorder %s40_s17, 2  ;;  %p58_p1 = scmp.ne.s32.totalorder %s1119_s11, %s1115_s10 }
   0xb   : > { %p59_p2 = scmp.eq.s32.totalorder %s1131_s14, 0  ;;  %p64_p3 = scmp.ne.s32.totalorder %s1115_s10, %s1111_s9 }
   0xc   : > { %s1849_s17 = smov (%p42_p0, %s40_s17), 0  ;;  %p65_p5 = scmp.eq.s32.totalorder %s779_s15, 0 }
   0xd   : > { %p1197_p4 = por %p59_p2, %p58_p1  ;;  %s46_s20 = ssub.s32 %s1127_s13, %s1849_s17 }
   0xe   : > { %p120_p6 = scmp.eq.s32.totalorder %s779_s15, 1  ;;  %p49_p7 = scmp.eq.s32.totalorder %s46_s20, 0 }
   0xf   : > { %p1203_p8 = por %p65_p5, %p64_p3  ;;  %p126_p10 = scmp.eq.s32.totalorder %s780_s16, 1 }
  0x10   : > { %p1207_p9 = por %p120_p6, %p58_p1  ;;  %p882_p13 = scmp.lt.s32.totalorder %s1131_s14, 2 }
  0x11   : > { %s1820_s21 = scalar_select %p1203_p8, 1, 0 }
  0x12   : > { %s1821_s22 = scalar_select %p1207_p9, 1, 0 }
  0x13   : > { %s1212_s23 = scalar_select %p49_p7, %s1119_s11, %s51_s18  }
  0x14   : > { %p1214_p11 = por %p126_p10, %p64_p3  ;;  %s1221_s25 = sand.u32 1, %s1119_s11  }
  0x15   : > { %s783_s26 = sshll.u32 %s1221_s25, 7  ;;  %s862_s27 = sshll.u32 %s1127_s13, 11 }
  0x16   : > { %s1822_s24 = scalar_select %p1214_p11, 1, 0 }
  0x17   : > { %s1228_s30 = scalar_lea.hbm %s1808_s0, %s862_s27  ;;  %s150_s3 = scalar_lea.vmem [#allocation2], %s783_s26 }
  0x18   : > { %s160_s4 = sshll.u32 %s150_s3, 4  ;;  %p1234_p0 = pnand %p882_p13, %p1197_p4  ;;  %s1230_s4 = int_to_ptr.vmem [resolvable:$true] %s160_s4 }
  0x19   : > { %s147_s6 = scalar_lea.sflag [#allocation3], %s1221_s25  ;;  %s985_s7 = scalar_lea.hbm %s1228_s30, 2048 }
  0x1a   : > { %p986_p2 = scmp.ne.s32.totalorder %s1228_s30, %s985_s7  ;;  %p987_p3 = pneg %p1234_p0 }
  0x1b   : > { %s990_s16 = scalar_lea.hbm %s1808_s0, 4096  ;;  %p991_p4 = scmp.lt.u32.totalorder %s1228_s30, %s1808_s0 }
  0x1c   : > { %p988_p5 = pnand %p987_p3, %p986_p2  ;;  %p992_p7 = scmp.lt.u32.totalorder %s990_s16, %s985_s7 }
  0x1d   : > { %p994_p13 = scmp.lt.u32.totalorder %s985_s7, %s1228_s30 }
  0x1e   : > { %p989_p6 = pneg %p988_p5  ;;  %p993_p10 = por %p992_p7, %p991_p4 }
  0x20   : > { %p995_p12 = por %p994_p13, %p993_p10 }
  0x22   : > { %p996_p1 = pnand %p995_p12, %p989_p6 }
  0x24   : > { %999 = shalt.err (!%p996_p1)
}
  0x25   : > { %s1000_s20 = scalar_lea.vmem %s1230_s4, 2048  ;;  %s1133_s26 = smov [#allocation2]  }
  0x26   : > { %p1001_p2 = scmp.ne.s32.totalorder %s1230_s4, %s1000_s20  ;;  %s1005_s27 = sshll.u32 %s1133_s26, 4  ;;  %s1006_s27 = int_to_ptr.vmem [resolvable:$false] %s1005_s27 }
  0x27   : > { %s1007_s28 = scalar_lea.vmem %s1006_s27, 4096  ;;  %p1008_p9 = scmp.lt.s32.totalorder %s1230_s4, %s1006_s27 }
  0x28   : > { %p1003_p5 = pnand %p1001_p2, %p987_p3  ;;  %p1009_p4 = scmp.lt.s32.totalorder %s1007_s28, %s1000_s20 }
  0x2a   : > { %p1004_p11 = pneg %p1003_p5  ;;  %p1010_p7 = por %p1009_p4, %p1008_p9 }
  0x2c   : > { %p1011_p10 = pnand %p1010_p7, %p1004_p11 }
  0x2e   : > { %1014 = shalt.err (!%p1011_p10)
}
  0x2f   : > { %s1134_s29 = smov 128   ;;  %s1135_s3 = smov 8  }
  0x30   : > { %874 = dma.hbm_to_vmem [thread:$0]  (!%p1234_p0), %s1228_s30, 2048, %s1230_s4, %s147_s6, %s1134_s29, %s1134_s29, %s1135_s3  }
  0x31   : > { %p188_p12 = scmp.lt.s32.totalorder %s1131_s14, 3  ;;  %s786_s7 = sshll.u32 %s1221_s25, 3 }
  0x32   : > { %s787_s8 = sshll.u32 %s1127_s13, 7  ;;  %p1824_p9 = scmp.ge.s32.totalorder %s1131_s14, 1 }
  0x33   : > { %s1279_s19 = scalar_lea.hbm %s1809_s1, %s787_s8  ;;  %s174_s20 = scalar_lea.vmem [#allocation5], %s786_s7 }
  0x34   : > { %p1272_p11 = pnand %p1824_p9, %p188_p12  ;;  %s183_s26 = sshll.u32 %s174_s20, 4  ;;  %s184_s26 = int_to_ptr.vmem [resolvable:$true] %s183_s26 }
  0x35   : > { %s171_s30 = scalar_lea.sflag [#allocation6], %s1221_s25  ;;  %s1015_s4 = scalar_lea.hbm %s1279_s19, 128 }
  0x36   : > { %s1825_s15 = scalar_select %p1272_p11, 1, 0 }
  0x37   : > { %p1016_p1 = scmp.ne.s32.totalorder %s1279_s19, %s1015_s4  ;;  %s1020_s28 = scalar_lea.hbm %s1809_s1, 256 }
  0x38   : > { %p1021_p2 = scmp.lt.u32.totalorder %s1279_s19, %s1809_s1  ;;  %p1022_p5 = scmp.lt.u32.totalorder %s1020_s28, %s1015_s4 }
  0x39   : > { %p1018_p6 = pnand %p1016_p1, %p987_p3  ;;  %p1024_p7 = scmp.lt.u32.totalorder %s1015_s4, %s1279_s19 }
  0x3a   : > { %p1023_p4 = por %p1022_p5, %p1021_p2 }
  0x3b   : > { %p1019_p13 = pneg %p1018_p6 }
  0x3c   : > { %p1025_p10 = por %p1024_p7, %p1023_p4 }
  0x3e   : > { %p1026_p12 = pnand %p1025_p10, %p1019_p13 }
  0x40   : > { %1029 = shalt.err (!%p1026_p12)
}
  0x41   : > { %s1030_s25 = scalar_lea.vmem %s184_s26, 128  ;;  %s1136_s7 = smov [#allocation5]  }
  0x42   : > { %p1031_p9 = scmp.ne.s32.totalorder %s184_s26, %s1030_s25  ;;  %s1035_s8 = sshll.u32 %s1136_s7, 4  ;;  %s1036_s8 = int_to_ptr.vmem [resolvable:$false] %s1035_s8 }
  0x43   : > { %s1037_s16 = scalar_lea.vmem %s1036_s8, 256  ;;  %p1038_p8 = scmp.lt.s32.totalorder %s184_s26, %s1036_s8 }
  0x44   : > { %p1033_p1 = pnand %p1031_p9, %p987_p3  ;;  %p1039_p11 = scmp.lt.s32.totalorder %s1037_s16, %s1030_s25 }
  0x46   : > { %p1034_p6 = pneg %p1033_p1  ;;  %p1040_p2 = por %p1039_p11, %p1038_p8 }
  0x48   : > { %p1041_p5 = pnand %p1040_p2, %p1034_p6 }
  0x4a   : > { %1044 = shalt.err (!%p1041_p5)
}
  0x4b   : > { %877 = dma.hbm_to_vmem [thread:$0]  (!%p1234_p0), %s1279_s19, 128, %s184_s26, %s171_s30  }
  0x4c   : > { %p1826_p13 = scmp.ne.s32.totalorder %s1825_s15, 0 }
  0x4e   : > { %192 = sbr.rel (%p1826_p13) target bundleno = 195 (0xc3), region = 28 }
  0x55   : > { %s1304_s18 = sand.u32 1, %s1115_s10   ;;  %p1827_p8 = scmp.ne.s32.totalorder %s1820_s21, 0 }
  0x56   : > { %s789_s20 = sshll.u32 %s1304_s18, 7  ;;  %s195_s4 = scalar_lea.sflag [#allocation3], %s1304_s18 }
  0x57   : > { %s1308_s6 = scalar_lea.vmem [#allocation2], %s789_s20 }
  0x58   : > { %1098 = dma.done.wait (%p1827_p8), %s195_s4, 2048  }
  0x59   : > { %1100 = vsyncadd (%p1827_p8), %s195_s4, 4294965248  ;;  %s790_s5 = sshll.u32 %s1304_s18, 3  ;;  %s204_s15 = scalar_lea.sflag [#allocation6], %s1304_s18 }
  0x5a   : > { %s1316_s19 = scalar_lea.vmem [#allocation5], %s790_s5 }
  0x5b   : > { %1102 = dma.done.wait (%p1827_p8), %s204_s15, 128  }
  0x5c   : > { %1104 = vsyncadd (%p1827_p8), %s204_s15, 4294967168  ;;  %v1323_v0 = vld [vmem:[%s1308_s6] sm:$0xff]  ;;  %v1326_v1 = vld [vmem:[%s1308_s6 + $0x8] sm:$0xff]  ;;  %s863_s21 = smul.u32 104, %s1304_s18  ;;  %s648_s25 = scalar_lea.sflag [#allocation4], %s1304_s18 }
  0x5d   : > { %v1329_v2 = vld [vmem:[%s1308_s6 + $0x10] sm:$0xff]  ;;  %v1332_v3 = vld [vmem:[%s1308_s6 + $0x18] sm:$0xff]  ;;  %v1335_v4 = vld [vmem:[%s1308_s6 + $0x20] sm:$0xff]  ;;  %s864_s30 = smul.u32 1664, %s1123_s12  ;;  %p1840_p3 = scmp.ne.s32.totalorder %s1821_s22, 0 }
  0x5e   : > { %v1338_v5 = vld [vmem:[%s1308_s6 + $0x28] sm:$0xff]  ;;  %v1341_v6 = vld [vmem:[%s1308_s6 + $0x30] sm:$0xff]  ;;  %v1344_v7 = vld [vmem:[%s1308_s6 + $0x38] sm:$0xff]  ;;  %v262_v8 = vmax.f32 %v1323_v0, %v1335_v4  ;;  %s1513_s26 = scalar_lea.vmem [#allocation7], %s863_s21  ;;  %s1138_s12 = smov [#allocation7]  }
  0x5f   : > { %v263_v9 = vmax.f32 %v1326_v1, %v1338_v5  ;;  %v1351_v10 = vld [vmem:[%s1308_s6 + $0x40] sm:$0xff]  ;;  %v264_v11 = vmax.f32 %v1329_v2, %v1341_v6  ;;  %v265_v12 = vmax.f32 %v1332_v3, %v1344_v7  ;;  %v1358_v13 = vld [vmem:[%s1308_s6 + $0x48] sm:$0xff]  ;;  %v1361_v14 = vld [vmem:[%s1308_s6 + $0x50] sm:$0xff]  ;;  %s663_s27 = sshll.u32 %s1513_s26, 4  ;;  %s1756_s3 = scalar_lea.hbm %s1810_s2, %s864_s30  ;;  %s1758_s27 = int_to_ptr.vmem [resolvable:$true] %s663_s27 }
  0x60   : > { %v1364_v15 = vld [vmem:[%s1308_s6 + $0x58] sm:$0xff]  ;;  %v271_v16 = vmax.f32 %v262_v8, %v1351_v10  ;;  %v1369_v18 = vld [vmem:[%s1308_s6 + $0x60] sm:$0xff]  ;;  %v1372_v19 = vld [vmem:[%s1308_s6 + $0x68] sm:$0xff]  ;;  %s1045_s7 = scalar_lea.vmem %s1758_s27, 1664  ;;  %s1049_s8 = sshll.u32 %s1138_s12, 4  ;;  %s1050_s8 = int_to_ptr.vmem [resolvable:$false] %s1049_s8 }
  0x61   : > { %v272_v17 = vmax.f32 %v263_v9, %v1358_v13  ;;  %v1375_v20 = vld [vmem:[%s1308_s6 + $0x70] sm:$0xff]  ;;  %v273_v21 = vmax.f32 %v264_v11, %v1361_v14  ;;  %v274_v22 = vmax.f32 %v265_v12, %v1364_v15  ;;  %v1380_v23 = vld [vmem:[%s1308_s6 + $0x78] sm:$0xff]  ;;  %v368_v42 = vld [vmem:[%s1316_s19] sm:$0xff]  ;;  %v1137_v12 = vmov 0.0   ;;  %p1046_p0 = scmp.ne.s32.totalorder %s1758_s27, %s1045_s7  ;;  %s1051_s16 = scalar_lea.vmem %s1050_s8, 3328 }
  0x62   : > { %v1383_v24 = vmax.f32 %v271_v16, %v1369_v18  ;;  %v1419_v49 = vunpack.c.0.s8 %v368_v42  ;;  %v1423_v52 = vunpack.c.1.s8 %v368_v42  ;;  %v1429_v57 = vunpack.c.2.s8 %v368_v42  ;;  %p1052_p7 = scmp.lt.s32.totalorder %s1758_s27, %s1050_s8  ;;  %p1053_p10 = scmp.lt.s32.totalorder %s1051_s16, %s1045_s7 }
  0x63   : > { %v1386_v25 = vmax.f32 %v272_v17, %v1372_v19  ;;  %v1389_v26 = vmax.f32 %v273_v21, %v1375_v20  ;;  %v1392_v27 = vmax.f32 %v274_v22, %v1380_v23  ;;  %v1433_v60 = vunpack.c.3.s8 %v368_v42  ;;  %p1047_p11 = pnand %p1046_p0, %p1840_p3 }
  0x64   : > { %1828 = vst [vmem:[#allocation11_spill] sm:$0xff] %v1383_v24  ;;  %v284_v28 = vsub.f32 %v1323_v0, %v1383_v24  ;;  %v296_v30 = vsub.f32 %v1335_v4, %v1383_v24  ;;  %v312_v41 = vsub.f32 %v1351_v10, %v1383_v24  ;;  %v328_v51 = vsub.f32 %v1369_v18, %v1383_v24  ;;  %p1054_p12 = por %p1053_p10, %p1052_p7 }
  0x65   : > { %1829 = vst [vmem:[#allocation12_spill] sm:$0xff] %v1386_v25  ;;  %1830 = vst [vmem:[#allocation13_spill] sm:$0xff] %v1389_v26  ;;  %v285_v29 = vsub.f32 %v1326_v1, %v1386_v25  ;;  %v286_v31 = vsub.f32 %v1329_v2, %v1389_v26  ;;  %v287_v32 = vsub.f32 %v1332_v3, %v1392_v27  ;;  %vm385_vm0 = vcmp.eq.s32.totalorder %v1419_v49, 0  ;;  %p1048_p4 = pneg %p1047_p11 }
  0x66   : > { %1831 = vst [vmem:[#allocation14_spill] sm:$0xff] %v1392_v27  ;;  %v297_v33 = vsub.f32 %v1338_v5, %v1386_v25  ;;  %v288_v34 = vmul.f32 1.442695, %v284_v28  ;;  %v298_v36 = vsub.f32 %v1341_v6, %v1389_v26  ;;  %v299_v39 = vsub.f32 %v1344_v7, %v1392_v27 }
  0x67   : > { %v290_v35 = vmul.f32 1.442695, %v285_v29  ;;  %v292_v37 = vmul.f32 1.442695, %v286_v31  ;;  %v294_v38 = vmul.f32 1.442695, %v287_v32  ;;  %v313_v44 = vsub.f32 %v1358_v13, %v1386_v25  ;;  %p1055_p9 = pnand %p1054_p12, %p1048_p4 }
  0x68   : > { %937 = vpow2.f32 %v288_v34  ;;  %v300_v40 = vmul.f32 1.442695, %v296_v30  ;;  %v302_v43 = vmul.f32 1.442695, %v297_v33  ;;  %v304_v45 = vmul.f32 1.442695, %v298_v36 }
  0x69   : > { %939 = vpow2.f32 %v290_v35  ;;  %v314_v46 = vsub.f32 %v1361_v14, %v1389_v26  ;;  %v306_v47 = vmul.f32 1.442695, %v299_v39  ;;  %v315_v48 = vsub.f32 %v1364_v15, %v1392_v27 }
  0x6a   : > { %941 = vpow2.f32 %v292_v37  ;;  %v316_v50 = vmul.f32 1.442695, %v312_v41  ;;  %v318_v53 = vmul.f32 1.442695, %v313_v44  ;;  %v329_v54 = vsub.f32 %v1372_v19, %v1386_v25 }
  0x6b   : > { %943 = vpow2.f32 %v294_v38  ;;  %v320_v55 = vmul.f32 1.442695, %v314_v46  ;;  %v330_v56 = vsub.f32 %v1375_v20, %v1389_v26  ;;  %v322_v58 = vmul.f32 1.442695, %v315_v48 }
  0x6c   : > { %945 = vpow2.f32 %v300_v40  ;;  %v331_v59 = vsub.f32 %v1380_v23, %v1392_v27  ;;  %v332_v61 = vmul.f32 1.442695, %v328_v51  ;;  %vm386_vm1 = vcmp.eq.s32.totalorder %v1423_v52, 0 }
  0x6d   : > { %947 = vpow2.f32 %v302_v43  ;;  %v334_v62 = vmul.f32 1.442695, %v329_v54  ;;  %v336_v8 = vmul.f32 1.442695, %v330_v56  ;;  %vm387_vm2 = vcmp.eq.s32.totalorder %v1429_v57, 0 }
  0x6e   : > { %949 = vpow2.f32 %v304_v45  ;;  %v338_v11 = vmul.f32 1.442695, %v331_v59  ;;  %v1443_v16 = vsel %vm385_vm0, 1.0, %v1137_v12  ;;  %v1446_v17 = vsel %vm386_vm1, 1.0, %v1137_v12 }
  0x6f   : > { %951 = vpow2.f32 %v306_v47  ;;  %vm388_vm3 = vcmp.eq.s32.totalorder %v1433_v60, 0  ;;  %v428_v22 = vadd.f32 %v1446_v17, %v1443_v16  ;;  %v1457_v29 = vsel %vm387_vm2, 1.0, %v1137_v12 }
  0x70   : > { %953 = vpow2.f32 %v316_v50  ;;  %vm445_vm4 = vcmp.eq.s32.totalorder %v1419_v49, 1  ;;  %vm446_vm5 = vcmp.eq.s32.totalorder %v1423_v52, 1  ;;  %vm447_vm6 = vcmp.eq.s32.totalorder %v1429_v57, 1 }
  0x71   : > { %955 = vpow2.f32 %v318_v53  ;;  %v429_v31 = vadd.f32 %v1457_v29, %v428_v22  ;;  %v1470_v34 = vsel %vm388_vm3, 1.0, %v1137_v12  ;;  %v1478_v38 = vsel %vm445_vm4, 1.0, %v1137_v12 }
  0x72   : > { %v1437_v63 = vpop.eup %937  ;;  %957 = vpow2.f32 %v320_v55  ;;  %v1481_v39 = vsel %vm446_vm5, 1.0, %v1137_v12  ;;  %vm448_vm7 = vcmp.eq.s32.totalorder %v1433_v60, 1  ;;  %v1489_v42 = vsel %vm447_vm6, 1.0, %v1137_v12 }
  0x73   : > { %v1440_v9 = vpop.eup %939  ;;  %959 = vpow2.f32 %v322_v58  ;;  %v430_v37 = vadd.f32 %v1470_v34, %v429_v31  ;;  %v489_v43 = vadd.f32 %v1481_v39, %v1478_v38  ;;  %vm506_vm8 = vcmp.eq.s32.totalorder %v1419_v49, 2 }
  0x74   : > { %v1448_v21 = vpop.eup %941  ;;  %961 = vpow2.f32 %v332_v61  ;;  %vm507_vm9 = vcmp.eq.s32.totalorder %v1423_v52, 2  ;;  %v437_v48 = vmul.f32 %v1443_v16, %v1323_v0  ;;  %vm508_vm10 = vcmp.eq.s32.totalorder %v1429_v57, 2 }
  0x75   : > { %v1453_v28 = vpop.eup %943  ;;  %963 = vpow2.f32 %v334_v62  ;;  %v490_v50 = vadd.f32 %v1489_v42, %v489_v43  ;;  %v438_v54 = vmul.f32 %v1446_v17, %v1326_v1  ;;  %814 = vst [vmem:[%s1513_s26 + $0x40] sm:$0xff] %v430_v37  ;;  %v1519_v0 = vsel %vm448_vm7, 1.0, %v1137_v12 }
  0x76   : > { %v1461_v30 = vpop.eup %945  ;;  %965 = vpow2.f32 %v336_v8  ;;  %vm509_vm11 = vcmp.eq.s32.totalorder %v1433_v60, 2  ;;  %v1529_v1 = vsel %vm506_vm8, 1.0, %v1137_v12  ;;  %v1534_v59 = vsel %vm507_vm9, 1.0, %v1137_v12 }
  0x77   : > { %v1465_v32 = vpop.eup %947  ;;  %v308_v33 = vadd.f32 %v1461_v30, %v1437_v63  ;;  %967 = vpow2.f32 %v338_v11  ;;  %v491_v58 = vadd.f32 %v1519_v0, %v490_v50  ;;  %v439_v8 = vmul.f32 %v1457_v29, %v1329_v2 }
  0x78   : > { %v1472_v35 = vpop.eup %949  ;;  %v309_v36 = vadd.f32 %v1465_v32, %v1440_v9  ;;  %v1544_v11 = vsel %vm508_vm10, 1.0, %v1137_v12  ;;  %v550_v22 = vadd.f32 %v1534_v59, %v1529_v1  ;;  %vm567_vm12 = vcmp.eq.s32.totalorder %v1419_v49, 3 }
  0x79   : > { %v1483_v40 = vpop.eup %951  ;;  %v310_v41 = vadd.f32 %v1472_v35, %v1448_v21  ;;  %vm568_vm13 = vcmp.eq.s32.totalorder %v1423_v52, 3  ;;  %v498_v37 = vmul.f32 %v1478_v38, %v1335_v4  ;;  %824 = vst [vmem:[%s1513_s26 + $0x48] sm:$0xff] %v491_v58  ;;  %vm569_vm14 = vcmp.eq.s32.totalorder %v1429_v57, 3 }
  0x7a   : > { %v1493_v44 = vpop.eup %953  ;;  %v311_v45 = vadd.f32 %v1483_v40, %v1453_v28  ;;  %v551_v43 = vadd.f32 %v1544_v11, %v550_v22  ;;  %v1570_v50 = vsel %vm567_vm12, 1.0, %v1137_v12  ;;  %v1575_v27 = vsel %vm568_vm13, 1.0, %v1137_v12 }
  0x7b   : > { %v1499_v46 = vpop.eup %955  ;;  %v324_v47 = vadd.f32 %v1493_v44, %v308_v33  ;;  %vm570_vm15 = vcmp.eq.s32.totalorder %v1433_v60, 3  ;;  %v611_v58 = vadd.f32 %v1575_v27, %v1570_v50  ;;  %v1585_v22 = vsel %vm569_vm14, 1.0, %v1137_v12 }
  0x7c   : > { %v1506_v51 = vpop.eup %957  ;;  %v325_v53 = vadd.f32 %v1499_v46, %v309_v36  ;;  %vm373_vm0 = vcmp.ge.s32.totalorder %v1419_v49, 0  ;;  %v559_v25 = vmul.f32 %v1529_v1, %v1351_v10  ;;  %vm374_vm1 = vcmp.ge.s32.totalorder %v1423_v52, 0 }
  0x7d   : > { %v1522_v55 = vpop.eup %959  ;;  %v326_v56 = vadd.f32 %v1506_v51, %v310_v41  ;;  %v1561_v41 = vsel %vm509_vm11, 1.0, %v1137_v12  ;;  %v612_v26 = vadd.f32 %v1585_v22, %v611_v58  ;;  %vm375_vm2 = vcmp.ge.s32.totalorder %v1429_v57, 0 }
  0x7e   : > { %v1536_v61 = vpop.eup %961  ;;  %v327_v62 = vadd.f32 %v1522_v55, %v311_v45  ;;  %vm376_vm3 = vcmp.ge.s32.totalorder %v1433_v60, 0  ;;  %v1610_v10 = vsel %vm373_vm0, 1.0, %v1137_v12  ;;  %v1615_v52 = vsel %vm374_vm1, 1.0, %v1137_v12 }
  0x7f   : > { %v1548_v31 = vpop.eup %963  ;;  %v340_v33 = vadd.f32 %v1536_v61, %v324_v47  ;;  %v621_v49 = vmul.f32 %v1575_v27, %v1372_v19 }
  0x80   : > { %v1553_v36 = vpop.eup %965  ;;  %v341_v2 = vadd.f32 %v1548_v31, %v325_v53  ;;  %v552_v53 = vadd.f32 %v1561_v41, %v551_v43  ;;  %v440_v43 = vmul.f32 %v1470_v34, %v1332_v3  ;;  %v560_v3 = vmul.f32 %v1534_v59, %v1358_v13 }
  0x81   : > { %1832 = vst [vmem:[#allocation15_spill] sm:$0xff] %v1553_v36  ;;  %v1564_v45 = vpop.eup %967  ;;  %v342_v47 = vadd.f32 %v1553_v36, %v326_v56  ;;  %969 = vrcp.f32 %v340_v33  ;;  %v499_v56 = vmul.f32 %v1481_v39, %v1338_v5  ;;  %v501_v5 = vmul.f32 %v1519_v0, %v1344_v7 }
  0x82   : > { %1833 = vst [vmem:[#allocation16_spill] sm:$0xff] %v1564_v45  ;;  %v343_v4 = vadd.f32 %v1564_v45, %v327_v62  ;;  %971 = vrcp.f32 %v341_v2  ;;  %v500_v62 = vmul.f32 %v1489_v42, %v1341_v6  ;;  %838 = vst [vmem:[%s1513_s26 + $0x50] sm:$0xff] %v552_v53  ;;  %v1597_v6 = vsel %vm570_vm15, 1.0, %v1137_v12 }
  0x83   : > { %973 = vrcp.f32 %v342_v47  ;;  %v613_v24 = vadd.f32 %v1597_v6, %v612_v26  ;;  %v502_v45 = vadd.f32 %v498_v37, %v437_v48  ;;  %v503_v58 = vadd.f32 %v499_v56, %v438_v54 }
  0x84   : > { %975 = vrcp.f32 %v343_v4  ;;  %v561_v7 = vmul.f32 %v1544_v11, %v1361_v14  ;;  %v504_v36 = vadd.f32 %v500_v62, %v439_v8  ;;  %v562_v13 = vmul.f32 %v1561_v41, %v1364_v15 }
  0x85   : > { %977 = vlog2.f32 %v340_v33  ;;  %v505_v26 = vadd.f32 %v501_v5, %v440_v43  ;;  %852 = vst [vmem:[%s1513_s26 + $0x58] sm:$0xff] %v613_v24  ;;  %v563_v14 = vadd.f32 %v559_v25, %v502_v45  ;;  %v564_v54 = vadd.f32 %v560_v3, %v503_v58 }
  0x86   : > { %979 = vlog2.f32 %v341_v2  ;;  %v620_v8 = vmul.f32 %v1570_v50, %v1369_v18  ;;  %v565_v56 = vadd.f32 %v561_v7, %v504_v36  ;;  %v622_v15 = vmul.f32 %v1585_v22, %v1375_v20 }
  0x87   : > { %v1627_v24 = vsel %vm375_vm2, 1.0, %v1137_v12  ;;  %v1632_v18 = vsel %vm376_vm3, 1.0, %v1137_v12  ;;  %981 = vlog2.f32 %v342_v47  ;;  %v1634_v19 = vadd.f32 %v562_v13, %v505_v26 }
  0x88   : > { %983 = vlog2.f32 %v343_v4  ;;  %v1638_v57 = vmul.f32 %v1597_v6, %v1380_v23  ;;  %v1640_v5 = vadd.f32 %v620_v8, %v563_v14  ;;  %v1644_v58 = vadd.f32 %v621_v49, %v564_v54 }
  0x8b   : > { %v970_v48 = vpop.eup %969 }
  0x8c   : > { %v972_v37 = vpop.eup %971  ;;  %v348_v53 = vmul.f32 %v970_v48, %v340_v33 }
  0x8d   : > { %v974_v62 = vpop.eup %973  ;;  %v349_v43 = vmul.f32 %v972_v37, %v341_v2 }
  0x8e   : > { %v976_v25 = vpop.eup %975  ;;  %v350_v33 = vmul.f32 %v974_v62, %v342_v47  ;;  %v352_v36 = vsub.f32 2.0, %v348_v53  ;;  %v1646_v47 = vadd.f32 %v622_v15, %v565_v56 }
  0x8f   : > { %v978_v20 = vpop.eup %977  ;;  %v351_v45 = vmul.f32 %v976_v25, %v343_v4  ;;  %v353_v2 = vsub.f32 2.0, %v349_v43 }
  0x90   : > { %v980_v3 = vpop.eup %979  ;;  %v354_v60 = vsub.f32 2.0, %v350_v33  ;;  %v1642_v12 = vmul.f32 %v970_v48, %v352_v36  ;;  %v1650_v26 = vmul.f32 0.6931472, %v978_v20 }
  0x91   : > { %v355_v7 = vsub.f32 2.0, %v351_v45  ;;  %v1648_v13 = vmul.f32 %v972_v37, %v353_v2  ;;  %v1652_v4 = vmul.f32 0.6931472, %v980_v3 }
  0x92   : > { %v1654_v53 = vmul.f32 %v974_v62, %v354_v60  ;;  %v397_v23 = vmul.f32 %v1437_v63, %v1642_v12  ;;  %v457_v48 = vmul.f32 %v1461_v30, %v1642_v12  ;;  %v518_v14 = vmul.f32 %v1493_v44, %v1642_v12 }
  0x93   : > { %v1662_v54 = vmul.f32 %v976_v25, %v355_v7  ;;  %v398_v8 = vmul.f32 %v1440_v9, %v1648_v13  ;;  %v458_v37 = vmul.f32 %v1465_v32, %v1648_v13  ;;  %v519_v56 = vmul.f32 %v1499_v46, %v1648_v13  ;;  %v1683_v25 = vpop.eup %981 }
  0x94   : > { %v399_v63 = vmul.f32 %v1448_v21, %v1654_v53  ;;  %v402_v49 = vmul.f32 %v1443_v16, %v397_v23  ;;  %v413_v30 = vmul.f32 %v397_v23, %v397_v23  ;;  %v459_v44 = vmul.f32 %v1472_v35, %v1654_v53 }
  0x95   : > { %v400_v15 = vmul.f32 %v1453_v28, %v1662_v54  ;;  %v403_v9 = vmul.f32 %v1446_v17, %v398_v8  ;;  %v414_v62 = vmul.f32 %v398_v8, %v398_v8  ;;  %v460_v32 = vmul.f32 %v1483_v40, %v1662_v54  ;;  %v1687_v17 = vpop.eup %983 }
  0x96   : > { %v404_v46 = vmul.f32 %v1457_v29, %v399_v63  ;;  %v415_v43 = vmul.f32 %v399_v63, %v399_v63  ;;  %v417_v21 = vmul.f32 %v1610_v10, %v413_v30  ;;  %v463_v16 = vmul.f32 %v1478_v38, %v457_v48 }
  0x97   : > { %v405_v35 = vmul.f32 %v1470_v34, %v400_v15  ;;  %v406_v33 = vadd.f32 %v403_v9, %v402_v49  ;;  %v416_v36 = vmul.f32 %v400_v15, %v400_v15  ;;  %v418_v28 = vmul.f32 %v1615_v52, %v414_v62 }
  0x98   : > { %v419_v20 = vmul.f32 %v1627_v24, %v415_v43  ;;  %v464_v40 = vmul.f32 %v1481_v39, %v458_v37  ;;  %v465_v29 = vmul.f32 %v1489_v42, %v459_v44  ;;  %v466_v45 = vmul.f32 %v1519_v0, %v460_v32 }
  0x99   : > { %v407_v2 = vadd.f32 %v406_v33, %v404_v46  ;;  %v420_v38 = vmul.f32 %v1632_v18, %v416_v36  ;;  %v421_v3 = vadd.f32 %v418_v28, %v417_v21  ;;  %v474_v60 = vmul.f32 %v457_v48, %v457_v48 }
  0x9a   : > { %v467_v34 = vadd.f32 %v464_v40, %v463_v16  ;;  %v475_v7 = vmul.f32 %v458_v37, %v458_v37  ;;  %v476_v23 = vmul.f32 %v459_v44, %v459_v44  ;;  %v477_v8 = vmul.f32 %v460_v32, %v460_v32 }
  0x9b   : > { %v408_v63 = vadd.f32 %v407_v2, %v405_v35  ;;  %v422_v49 = vadd.f32 %v421_v3, %v419_v20  ;;  %v478_v30 = vmul.f32 %v1610_v10, %v474_v60  ;;  %v520_v39 = vmul.f32 %v1506_v51, %v1654_v53  ;;  %v1835_v2 = vld [vmem:[#allocation16_spill] sm:$0xff] }
  0x9c   : > { %v468_v42 = vadd.f32 %v467_v34, %v465_v29  ;;  %v479_v0 = vmul.f32 %v1615_v52, %v475_v7  ;;  %v480_v15 = vmul.f32 %v1627_v24, %v476_v23  ;;  %v481_v48 = vmul.f32 %v1632_v18, %v477_v8  ;;  %v1834_v29 = vld [vmem:[#allocation15_spill] sm:$0xff] }
  0x9d   : > { %v423_v9 = vadd.f32 %v422_v49, %v420_v38  ;;  %v521_v37 = vmul.f32 %v1522_v55, %v1662_v54  ;;  %v524_v44 = vmul.f32 %v1529_v1, %v518_v14  ;;  %v525_v46 = vmul.f32 %v1534_v59, %v519_v56  ;;  %410 = vst [vmem:[%s1513_s26] sm:$0xff] %v408_v63 }
  0x9e   : > { %v469_v62 = vadd.f32 %v468_v42, %v466_v45  ;;  %v482_v32 = vadd.f32 %v479_v0, %v478_v30  ;;  %v526_v51 = vmul.f32 %v1544_v11, %v520_v39  ;;  %v535_v21 = vmul.f32 %v518_v14, %v518_v14  ;;  %v1837_v0 = vld [vmem:[#allocation12_spill] sm:$0xff] }
  0x9f   : > { %v527_v43 = vmul.f32 %v1561_v41, %v521_v37  ;;  %v536_v16 = vmul.f32 %v519_v56, %v519_v56  ;;  %v528_v33 = vadd.f32 %v525_v46, %v524_v44  ;;  %v537_v36 = vmul.f32 %v520_v39, %v520_v39  ;;  %812 = vst [vmem:[%s1513_s26 + $0x20] sm:$0xff] %v423_v9  ;;  %v1836_v39 = vld [vmem:[#allocation11_spill] sm:$0xff]  ;;  %v1839_v44 = vld [vmem:[#allocation14_spill] sm:$0xff] }
  0xa0   : > { %v483_v35 = vadd.f32 %v482_v32, %v480_v15  ;;  %v538_v28 = vmul.f32 %v521_v37, %v521_v37  ;;  %v539_v55 = vmul.f32 %v1610_v10, %v535_v21  ;;  %v579_v20 = vmul.f32 %v1536_v61, %v1642_v12  ;;  %820 = vst [vmem:[%s1513_s26 + $0x8] sm:$0xff] %v469_v62 }
  0xa1   : > { %v540_v1 = vmul.f32 %v1615_v52, %v536_v16  ;;  %v529_v11 = vadd.f32 %v528_v33, %v526_v51  ;;  %v541_v41 = vmul.f32 %v1627_v24, %v537_v36  ;;  %v580_v14 = vmul.f32 %v1548_v31, %v1648_v13 }
  0xa2   : > { %v484_v59 = vadd.f32 %v483_v35, %v481_v48  ;;  %v542_v56 = vmul.f32 %v1632_v18, %v538_v28  ;;  %v581_v45 = vmul.f32 %v1834_v29, %v1654_v53  ;;  %v582_v38 = vmul.f32 %v1835_v2, %v1662_v54 }
  0xa3   : > { %v543_v40 = vadd.f32 %v540_v1, %v539_v55  ;;  %v530_v61 = vadd.f32 %v529_v11, %v527_v43  ;;  %v585_v12 = vmul.f32 %v1570_v50, %v579_v20  ;;  %v586_v3 = vmul.f32 %v1575_v27, %v580_v14 }
  0xa4   : > { %v587_v34 = vmul.f32 %v1585_v22, %v581_v45  ;;  %v588_v31 = vmul.f32 %v1597_v6, %v582_v38  ;;  %v596_v13 = vmul.f32 %v579_v20, %v579_v20  ;;  %822 = vst [vmem:[%s1513_s26 + $0x28] sm:$0xff] %v484_v59  ;;  %v597_v23 = vmul.f32 %v580_v14, %v580_v14 }
  0xa5   : > { %v544_v60 = vadd.f32 %v543_v40, %v541_v41  ;;  %v589_v7 = vadd.f32 %v586_v3, %v585_v12  ;;  %v598_v8 = vmul.f32 %v581_v45, %v581_v45  ;;  %v599_v63 = vmul.f32 %v582_v38, %v582_v38  ;;  %834 = vst [vmem:[%s1513_s26 + $0x10] sm:$0xff] %v530_v61 }
  0xa6   : > { %v600_v54 = vmul.f32 %v1610_v10, %v596_v13  ;;  %v365_v49 = vmul.f32 0.6931472, %v1683_v25  ;;  %v601_v27 = vmul.f32 %v1615_v52, %v597_v23  ;;  %v367_v6 = vmul.f32 0.6931472, %v1687_v17  ;;  %v1838_v25 = vld [vmem:[#allocation13_spill] sm:$0xff] }
  0xa7   : > { %v545_v53 = vadd.f32 %v544_v60, %v542_v56  ;;  %v590_v50 = vadd.f32 %v589_v7, %v587_v34  ;;  %v602_v22 = vmul.f32 %v1627_v24, %v598_v8  ;;  %v603_v30 = vmul.f32 %v1632_v18, %v599_v63 }
  0xa8   : > { %v630_v42 = vadd.f32 %v1650_v26, %v1836_v39  ;;  %v631_v15 = vadd.f32 %v1652_v4, %v1837_v0  ;;  %v604_v9 = vadd.f32 %v601_v27, %v600_v54  ;;  %v632_v37 = vadd.f32 %v365_v49, %v1838_v25 }
  0xa9   : > { %v591_v48 = vadd.f32 %v590_v50, %v588_v31  ;;  %v633_v62 = vadd.f32 %v367_v6, %v1839_v44  ;;  %836 = vst [vmem:[%s1513_s26 + $0x30] sm:$0xff] %v545_v53  ;;  %v627_v17 = vadd.f32 %v1638_v57, %v1634_v19 }
  0xaa   : > { %v634_v32 = vmul.f32 %v1610_v10, %v630_v42  ;;  %v635_v26 = vmul.f32 %v1615_v52, %v631_v15  ;;  %v605_v46 = vadd.f32 %v604_v9, %v602_v22  ;;  %v636_v4 = vmul.f32 %v1627_v24, %v632_v37 }
  0xab   : > { %v637_v51 = vmul.f32 %v1632_v18, %v633_v62  ;;  %848 = vst [vmem:[%s1513_s26 + $0x18] sm:$0xff] %v591_v48 }
  0xac   : > { %v638_v43 = vsub.f32 %v634_v32, %v1640_v5  ;;  %v639_v21 = vsub.f32 %v635_v26, %v1644_v58  ;;  %v606_v16 = vadd.f32 %v605_v46, %v603_v30  ;;  %v640_v19 = vsub.f32 %v636_v4, %v1646_v47 }
  0xad   : > { %v641_v57 = vsub.f32 %v637_v51, %v627_v17 }
  0xae   : > { %v642_v10 = vadd.f32 %v639_v21, %v638_v43  ;;  %850 = vst [vmem:[%s1513_s26 + $0x38] sm:$0xff] %v606_v16 }
  0xb0   : > { %v643_v35 = vadd.f32 %v642_v10, %v640_v19 }
  0xb2   : > { %v644_v52 = vadd.f32 %v643_v35, %v641_v57 }
  0xb4   : > { %858 = vst [vmem:[%s1513_s26 + $0x60] sm:$0xff] %v644_v52 }
  0xb5   : > { %1058 = shalt.err (!%p1055_p9)
}
  0xb6   : > { %s1059_s20 = scalar_lea.hbm %s1756_s3, 1664  ;;  %s1063_s5 = scalar_lea.hbm %s1810_s2, 3328 }
  0xb7   : > { %p1060_p1 = scmp.ne.s32.totalorder %s1756_s3, %s1059_s20  ;;  %p1064_p5 = scmp.lt.u32.totalorder %s1756_s3, %s1810_s2 }
  0xb8   : > { %p1065_p13 = scmp.lt.u32.totalorder %s1063_s5, %s1059_s20  ;;  %p1067_p0 = scmp.lt.u32.totalorder %s1059_s20, %s1756_s3 }
  0xb9   : > { %p1061_p6 = pnand %p1060_p1, %p1840_p3 }
  0xba   : > { %p1066_p8 = por %p1065_p13, %p1064_p5 }
  0xbb   : > { %p1062_p2 = pneg %p1061_p6 }
  0xbc   : > { %p1068_p11 = por %p1067_p0, %p1066_p8 }
  0xbe   : > { %p1069_p4 = pnand %p1068_p11, %p1062_p2 }
  0xc0   : > { %1072 = shalt.err (!%p1069_p4)
}
  0xc1   : > { %s1139_s21 = smov 128   ;;  %s1140_s26 = smov 8  }
  0xc2   : > { %869 = dma.vmem_to_hbm [thread:$0]  (%p1840_p3), %s1758_s27, 1664, %s1756_s3, %s648_s25, %s1139_s21, %s1139_s21, %s1140_s26  }
  0xc3 PF: > { %s678_s30 = sand.u32 1, %s1111_s9   ;;  %p1841_p7 = scmp.ne.s32.totalorder %s1822_s24, 0 }
  0xc4   : > { %p1842_p10 = scmp.ge.s32.totalorder %s1131_s14, 2  ;;  %s679_s28 = scalar_lea.sflag [#allocation4], %s678_s30 }
  0xc6   : > { %p879_p12 = pnand %p1842_p10, %p1841_p7 }
  0xc8   : > { %1106 = dma.done.wait (!%p879_p12), %s679_s28, 1664  }
  0xc9   : > { %1108 = vsyncadd (!%p879_p12), %s679_s28, 4294965632  ;;  %s21_s14 = sadd.s32 1, %s1131_s14   ;;  %s1843_s9 = smov %s1115_s10 }
  0xca   : > { %p18_p9 = scmp.ge.s32.totalorder %s21_s14, 4   ;;  %s1844_s10 = smov %s1119_s11 }
  0xcb   : > { %s1845_s11 = smov %s1212_s23  ;;  %s1846_s12 = smov %s1127_s13 }
  0xcc   : > { %s1847_s13 = smov %s1849_s17  ;;  %20 = sbr.rel (!%p18_p9) target bundleno = 8 (0x8), region = 105 }
  0xd3   :  { %684 = vsyncpa [#allocation3], 1 }
  0xd4   :  { %686 = vsyncpa [#allocation3 + $0x1], 1 }
  0xd5   :  { %687 = vsyncpa [#allocation6], 1 }
  0xd6   :  { %689 = vsyncpa [#allocation6 + $0x1], 1 }
  0xd7   :  { %690 = vsyncpa [#allocation4], 1 }
  0xd8   :  { %692 = vsyncpa [#allocation4 + $0x1], 1 }

</bundles_post_ra>
